<compile_context>
chip_gen: v6e
topology: v6e:2x2x1
jax: 0.10.0
libtpu: 0.0.40
codegen_flags: <defaults>
</compile_context>

<pallas_src>
import jax
import jax.numpy as jnp
from jax import lax
from jax.experimental import pallas as pl
from jax.experimental.pallas import tpu as pltpu

# ---- static problem sizes (small, consistent with the module's forward) ----
B = 2              # batch
D = 32             # latent dim of `inp`
P = 8              # number of point primitives decoded per example
HPIX = 16
WPIX = 16
HW = HPIX * WPIX   # 256 (lane-dense: multiple of 128)
W_SHIFT = 4        # log2(WPIX)
SIG_EPS = 0.5      # floor added to sigma^2


def _sigmoid(x):
    return 1.0 / (1.0 + jnp.exp(-x))


def _softplus(x):
    # numerically-stable softplus, built from ops that lower cleanly on TPU
    return jnp.maximum(x, 0.0) + jnp.log1p(jnp.exp(-jnp.abs(x)))


def decoder_kernel(inp_ref, wT_ref, b_ref, out_ref):
    # inp_ref: (B, D)   whole latent batch
    # wT_ref : (3P, D)  decode weight
    # b_ref  : (1, 3P)  decode bias (lane-dense row)
    # out_ref: (B, HW)  soft-or rasterized images (flattened pixels), one slab store
    x = inp_ref[...]                                     # (B, D)

    # ---- decode_to_params: one batched MXU matmul -> lane-dense (B, 3P) ----
    raw = lax.dot_general(
        x, wT_ref[...], (((1,), (1,)), ((), ())),
        preferred_element_type=jnp.float32) + b_ref[...]  # (B, 3P)

    # lane-dense activations on whole parameter rows
    px_row = _sigmoid(raw[:, 0:P]) * (WPIX - 1)            # (B, P) x-coords in [0, W-1]
    py_row = _sigmoid(raw[:, P:2 * P]) * (HPIX - 1)        # (B, P) y-coords in [0, H-1]
    sigma2_row = _softplus(raw[:, 2 * P:3 * P]) + SIG_EPS  # (B, P)  get_sigma2
    inv_s2_row = pl.reciprocal(sigma2_row, approx=True)    # (B, P)  EUP, hoisted out of raster

    # reshape to (B, P, 1) only for the broadcast against the pixel grid
    px = px_row[:, :, None]
    py = py_row[:, :, None]
    inv_s2 = inv_s2_row[:, :, None]

    # ---- create_edt2: squared distance of every pixel to every primitive ----
    idx = lax.broadcasted_iota(jnp.int32, (1, 1, HW), 2)
    gx = (idx & (WPIX - 1)).astype(jnp.float32)            # pixel x  (idx % W, W is pow2)
    gy = (idx >> W_SHIFT).astype(jnp.float32)              # pixel y  (idx // W)
    edt2 = (gx - px) ** 2 + (gy - py) ** 2                 # (B, P, HW)

    # ---- raster_soft: exp(-edt2 / sigma2) then softor over primitives ----
    rasters = jnp.exp(-edt2 * inv_s2)                      # (B, P, HW)
    one_minus = 1.0 - rasters                              # (B, P, HW)

    # soft-or = 1 - prod over primitives; 3-deep tree of full-width multiplies (P = 8)
    t = one_minus[:, 0:4, :] * one_minus[:, 4:8, :]        # (B, 4, HW)
    t = t[:, 0:2, :] * t[:, 2:4, :]                        # (B, 2, HW)
    t = t[:, 0:1, :] * t[:, 1:2, :]                        # (B, 1, HW)

    out_ref[...] = 1.0 - t[:, 0, :]                        # (B, HW) single lane-dense store


def decoder_forward(inp, wT, b_row):
    """inp: (B, D) float32 -> images: (B, 1, H, W) float32 (NCHW)."""
    out = pl.pallas_call(
        decoder_kernel,
        out_shape=jax.ShapeDtypeStruct((B, HW), jnp.float32),
        # single invocation (no grid): whole arrays resident in VMEM, no per-batch
        # pipeline bookkeeping, no revolving buffers.
        in_specs=[
            pl.BlockSpec(memory_space=pltpu.MemorySpace.VMEM),   # latents (B, D)
            pl.BlockSpec(memory_space=pltpu.MemorySpace.VMEM),   # weight  (3P, D)
            pl.BlockSpec(memory_space=pltpu.MemorySpace.VMEM),   # bias    (1, 3P)
        ],
        out_specs=pl.BlockSpec(memory_space=pltpu.MemorySpace.VMEM),
    )(inp, wT, b_row)
    return out.reshape(B, 1, HPIX, WPIX)


def _reference_forward(inp, wT, b_row):
    """Pure-JAX reference of the same forward pass, for a sanity check."""
    raw = inp @ wT.T + b_row                                  # (B, 3P)
    px = jax.nn.sigmoid(raw[:, 0:P]) * (WPIX - 1)             # (B, P)
    py = jax.nn.sigmoid(raw[:, P:2 * P]) * (HPIX - 1)
    sigma2 = jax.nn.softplus(raw[:, 2 * P:3 * P]) + SIG_EPS
    ys, xs = jnp.meshgrid(jnp.arange(HPIX, dtype=jnp.float32),
                          jnp.arange(WPIX, dtype=jnp.float32), indexing="ij")
    edt2 = ((xs[None, None] - px[:, :, None, None]) ** 2
            + (ys[None, None] - py[:, :, None, None]) ** 2)   # (B, P, H, W)
    rasters = jnp.exp(-edt2 / sigma2[:, :, None, None])
    return 1.0 - jnp.prod(1.0 - rasters, axis=1, keepdims=True)  # (B, 1, H, W)


if __name__ == "__main__":
    key = jax.random.PRNGKey(0)
    k_in, k_w, k_b = jax.random.split(key, 3)

    inp = jax.random.normal(k_in, (B, D), dtype=jnp.float32)
    wT = 0.2 * jax.random.normal(k_w, (3 * P, D), dtype=jnp.float32)   # deterministic init
    b_row = 0.1 * jax.random.normal(k_b, (1, 3 * P), dtype=jnp.float32)

    images = decoder_forward(inp, wT, b_row)
    jax.block_until_ready(images)

    ref = _reference_forward(inp, wT, b_row)
    assert images.shape == (B, 1, HPIX, WPIX)
    # Looser tolerance only because the kernel uses the EUP approximate reciprocal
    # for 1/sigma2 (per perf feedback); outputs live in [0, 1].
    assert jnp.allclose(images, ref, atol=2e-2, rtol=2e-2)

    print("KERNEL_OK")
</pallas_src>

<mosaic_0001>
module attributes {stable_mosaic.version = 11 : i64} {
  func.func @decoder_kernel(%arg0: memref<2x32xf32, #tpu.memory_space<vmem>>, %arg1: memref<24x32xf32, #tpu.memory_space<vmem>>, %arg2: memref<1x24xf32, #tpu.memory_space<vmem>>, %arg3: memref<2x256xf32, #tpu.memory_space<vmem>>) attributes {dimension_semantics = [], scalar_prefetch = 0 : i64, scratch_operands = 0 : i64, tpu.core_type = #tpu.core_type<tc>} {
    %c0 = arith.constant 0 : index
    %c0_0 = arith.constant 0 : index
    %0 = vector.load %arg0[%c0, %c0_0] : memref<2x32xf32, #tpu.memory_space<vmem>>, vector<2x32xf32>
    %c0_1 = arith.constant 0 : index
    %c0_2 = arith.constant 0 : index
    %1 = vector.load %arg1[%c0_1, %c0_2] : memref<24x32xf32, #tpu.memory_space<vmem>>, vector<24x32xf32>
    %cst = arith.constant dense<0.000000e+00> : vector<2x24xf32>
    %2 = tpu.matmul %0, %1, %cst {dimension_numbers = #tpu.dot_dimension_numbers<[1], [1], [0], [0], [0, 0, 1, 0], [], []>} : vector<2x32xf32>, vector<24x32xf32>, vector<2x24xf32> -> vector<2x24xf32>
    %c0_3 = arith.constant 0 : index
    %c0_4 = arith.constant 0 : index
    %3 = vector.load %arg2[%c0_3, %c0_4] : memref<1x24xf32, #tpu.memory_space<vmem>>, vector<1x24xf32>
    %4 = vector.broadcast %3 : vector<1x24xf32> to vector<2x24xf32>
    %5 = arith.addf %2, %4 : vector<2x24xf32>
    %6 = vector.extract_strided_slice %5 {offsets = [0, 0], sizes = [2, 8], strides = [1, 1]} : vector<2x24xf32> to vector<2x8xf32>
    %cst_5 = arith.constant 0.000000e+00 : f32
    %7 = vector.broadcast %cst_5 : f32 to vector<2x8xf32>
    %8 = arith.subf %7, %6 : vector<2x8xf32>
    %9 = math.exp %8 : vector<2x8xf32>
    %cst_6 = arith.constant 1.000000e+00 : f32
    %10 = vector.broadcast %cst_6 : f32 to vector<2x8xf32>
    %11 = arith.addf %10, %9 : vector<2x8xf32>
    %cst_7 = arith.constant 1.000000e+00 : f32
    %12 = vector.broadcast %cst_7 : f32 to vector<2x8xf32>
    %13 = arith.divf %12, %11 : vector<2x8xf32>
    %cst_8 = arith.constant 1.500000e+01 : f32
    %14 = vector.broadcast %cst_8 : f32 to vector<2x8xf32>
    %15 = arith.mulf %13, %14 : vector<2x8xf32>
    %16 = vector.extract_strided_slice %5 {offsets = [0, 8], sizes = [2, 8], strides = [1, 1]} : vector<2x24xf32> to vector<2x8xf32>
    %cst_9 = arith.constant 0.000000e+00 : f32
    %17 = vector.broadcast %cst_9 : f32 to vector<2x8xf32>
    %18 = arith.subf %17, %16 : vector<2x8xf32>
    %19 = math.exp %18 : vector<2x8xf32>
    %cst_10 = arith.constant 1.000000e+00 : f32
    %20 = vector.broadcast %cst_10 : f32 to vector<2x8xf32>
    %21 = arith.addf %20, %19 : vector<2x8xf32>
    %cst_11 = arith.constant 1.000000e+00 : f32
    %22 = vector.broadcast %cst_11 : f32 to vector<2x8xf32>
    %23 = arith.divf %22, %21 : vector<2x8xf32>
    %cst_12 = arith.constant 1.500000e+01 : f32
    %24 = vector.broadcast %cst_12 : f32 to vector<2x8xf32>
    %25 = arith.mulf %23, %24 : vector<2x8xf32>
    %26 = vector.extract_strided_slice %5 {offsets = [0, 16], sizes = [2, 8], strides = [1, 1]} : vector<2x24xf32> to vector<2x8xf32>
    %cst_13 = arith.constant 0.000000e+00 : f32
    %27 = vector.broadcast %cst_13 : f32 to vector<2x8xf32>
    %28 = arith.maximumf %26, %27 : vector<2x8xf32>
    %29 = math.absf %26 : vector<2x8xf32>
    %cst_14 = arith.constant 0.000000e+00 : f32
    %30 = vector.broadcast %cst_14 : f32 to vector<2x8xf32>
    %31 = arith.subf %30, %29 : vector<2x8xf32>
    %32 = math.exp %31 : vector<2x8xf32>
    %33 = math.log1p %32 : vector<2x8xf32>
    %34 = arith.addf %28, %33 : vector<2x8xf32>
    %cst_15 = arith.constant 5.000000e-01 : f32
    %35 = vector.broadcast %cst_15 : f32 to vector<2x8xf32>
    %36 = arith.addf %34, %35 : vector<2x8xf32>
    %37 = tpu.reciprocal %36 {approx = true} : vector<2x8xf32> -> vector<2x8xf32>
    %38 = vector.shape_cast %15 : vector<2x8xf32> to vector<2x8x1xf32>
    %39 = vector.shape_cast %25 : vector<2x8xf32> to vector<2x8x1xf32>
    %40 = vector.shape_cast %37 : vector<2x8xf32> to vector<2x8x1xf32>
    %41 = tpu.iota {dimensions = array<i32: 2>} : vector<1x1x256xi32>
    %c15_i32 = arith.constant 15 : i32
    %42 = vector.broadcast %c15_i32 : i32 to vector<1x1x256xi32>
    %43 = arith.andi %41, %42 : vector<1x1x256xi32>
    %44 = arith.sitofp %43 : vector<1x1x256xi32> to vector<1x1x256xf32>
    %c4_i32 = arith.constant 4 : i32
    %45 = vector.broadcast %c4_i32 : i32 to vector<1x1x256xi32>
    %46 = arith.shrsi %41, %45 : vector<1x1x256xi32>
    %47 = arith.sitofp %46 : vector<1x1x256xi32> to vector<1x1x256xf32>
    %48 = vector.broadcast %44 : vector<1x1x256xf32> to vector<2x8x256xf32>
    %49 = vector.broadcast %38 : vector<2x8x1xf32> to vector<2x8x256xf32>
    %50 = arith.subf %48, %49 : vector<2x8x256xf32>
    %51 = arith.mulf %50, %50 : vector<2x8x256xf32>
    %52 = vector.broadcast %47 : vector<1x1x256xf32> to vector<2x8x256xf32>
    %53 = vector.broadcast %39 : vector<2x8x1xf32> to vector<2x8x256xf32>
    %54 = arith.subf %52, %53 : vector<2x8x256xf32>
    %55 = arith.mulf %54, %54 : vector<2x8x256xf32>
    %56 = arith.addf %51, %55 : vector<2x8x256xf32>
    %cst_16 = arith.constant 0.000000e+00 : f32
    %57 = vector.broadcast %cst_16 : f32 to vector<2x8x256xf32>
    %58 = arith.subf %57, %56 : vector<2x8x256xf32>
    %59 = vector.broadcast %40 : vector<2x8x1xf32> to vector<2x8x256xf32>
    %60 = arith.mulf %58, %59 : vector<2x8x256xf32>
    %61 = math.exp %60 : vector<2x8x256xf32>
    %cst_17 = arith.constant 1.000000e+00 : f32
    %62 = vector.broadcast %cst_17 : f32 to vector<2x8x256xf32>
    %63 = arith.subf %62, %61 : vector<2x8x256xf32>
    %64 = vector.extract_strided_slice %63 {offsets = [0, 0, 0], sizes = [2, 4, 256], strides = [1, 1, 1]} : vector<2x8x256xf32> to vector<2x4x256xf32>
    %65 = vector.extract_strided_slice %63 {offsets = [0, 4, 0], sizes = [2, 4, 256], strides = [1, 1, 1]} : vector<2x8x256xf32> to vector<2x4x256xf32>
    %66 = arith.mulf %64, %65 : vector<2x4x256xf32>
    %67 = vector.extract_strided_slice %66 {offsets = [0, 0, 0], sizes = [2, 2, 256], strides = [1, 1, 1]} : vector<2x4x256xf32> to vector<2x2x256xf32>
    %68 = vector.extract_strided_slice %66 {offsets = [0, 2, 0], sizes = [2, 2, 256], strides = [1, 1, 1]} : vector<2x4x256xf32> to vector<2x2x256xf32>
    %69 = arith.mulf %67, %68 : vector<2x2x256xf32>
    %70 = vector.extract_strided_slice %69 {offsets = [0, 0, 0], sizes = [2, 1, 256], strides = [1, 1, 1]} : vector<2x2x256xf32> to vector<2x1x256xf32>
    %71 = vector.extract_strided_slice %69 {offsets = [0, 1, 0], sizes = [2, 1, 256], strides = [1, 1, 1]} : vector<2x2x256xf32> to vector<2x1x256xf32>
    %72 = arith.mulf %70, %71 : vector<2x1x256xf32>
    %73 = vector.shape_cast %72 : vector<2x1x256xf32> to vector<2x256xf32>
    %cst_18 = arith.constant 1.000000e+00 : f32
    %74 = vector.broadcast %cst_18 : f32 to vector<2x256xf32>
    %75 = arith.subf %74, %73 : vector<2x256xf32>
    %c0_19 = arith.constant 0 : index
    %c0_20 = arith.constant 0 : index
    %76 = vector.load %arg3[%c0_19, %c0_20] : memref<2x256xf32, #tpu.memory_space<vmem>>, vector<2x256xf32>
    tpu.vector_store %arg3[%c0_19, %c0_20], %75 {strides = array<i32>} : memref<2x256xf32, #tpu.memory_space<vmem>>, vector<2x256xf32>,
    return
  }
}

</mosaic_0001>

<bundles_post_ra>
// kernel: tpu_custom_call.1
= control target key start
LH: loop header
LB: loop body
LE: loop exit
PB: predicated region body
PF: predicated region fallthrough
CT: control target
= control target key end

     0   :  { %8 = vsyncpa [#allocation3], 0  ;;  %s506_s0 = inlined_call_operand.hbm [shape: f32[2,32], index: 0, kind: input, shape index: {}]   ;;  %s507_s1 = inlined_call_operand.hbm [shape: f32[24,32], index: 1, kind: input, shape index: {}]   ;;  %s508_s2 = inlined_call_operand.vmem [shape: f32[1,24], index: 2, kind: input, shape index: {}]   ;;  %s509_s3 = inlined_call_operand.hbm [shape: f32[2,256], index: 3, kind: output, shape index: {}]  }
   0x1   :  { %9 = vsyncpa [#allocation6], 0 }
   0x2   :  { %10 = vsyncpa [#allocation4], 0  ;;  %s461_s12 = smov [#allocation2]   ;;  %s462_s14 = smov [#allocation5]  }
   0x3   :  { %s17_s13 = sshll.u32 %s461_s12, 4  ;;  %s26_s15 = sshll.u32 %s462_s14, 4  ;;  %s18_s13 = int_to_ptr.vmem [resolvable:$true] %s17_s13  ;;  %s27_s15 = int_to_ptr.vmem [resolvable:$true] %s26_s15 }
   0x4   :  { %s403_s16 = scalar_lea.vmem %s18_s13, 32  ;;  %p408_p1 = scmp.lt.s32.totalorder %s18_s13, %s18_s13 }
   0x5   :  { %p404_p0 = scmp.ne.s32.totalorder %s18_s13, %s403_s16  ;;  %p409_p2 = scmp.lt.s32.totalorder %s403_s16, %s403_s16 }
   0x7   :  { %p410_p3 = por %p409_p2, %p408_p1 }
   0x9   :  { %p411_p4 = pnand %p410_p3, %p404_p0 }
   0xb   :  { %414 = shalt.err (!%p411_p4)
}
   0xc   :  { %20 = dma.hbm_to_vmem [thread:$0]  %s506_s0, 32, %s18_s13, [#allocation3]  }
   0xd   :  { %s423_s19 = scalar_lea.vmem %s27_s15, 384  ;;  %p428_p6 = scmp.lt.s32.totalorder %s27_s15, %s27_s15 }
   0xe   :  { %p424_p5 = scmp.ne.s32.totalorder %s27_s15, %s423_s19  ;;  %p429_p7 = scmp.lt.s32.totalorder %s423_s19, %s423_s19 }
  0x10   :  { %p430_p8 = por %p429_p7, %p428_p6 }
  0x12   :  { %p431_p9 = pnand %p430_p8, %p424_p5 }
  0x14   :  { %434 = shalt.err (!%p431_p9)
}
  0x15   :  { %s463_s20 = smov 128   ;;  %s464_s21 = smov 8  }
  0x16   :  { %32 = dma.hbm_to_vmem [thread:$0]  %s507_s1, 384, %s27_s15, [#allocation6], %s463_s20, %s463_s20, %s464_s21  }
  0x17   :  { %455 = dma.done.wait [#allocation3], 32  }
  0x18   :  { %456 = vsyncadd [#allocation3], 4294967264 }
  0x19   :  { %457 = dma.done.wait [#allocation6], 384  }
  0x1a   :  { %458 = vsyncadd [#allocation6], 4294966912  ;;  %v465_v0 = vmov 0.0   ;;  %vm466_vm0 = vmmov 0   ;;  %vm52_vm1 = vcmask 261120   ;;  %v44_v1 = vld [vmem:[#allocation5 + $0x10] sm:$0xff]  ;;  %v159_v18 = vlaneseq }
  0x1b   :  { %360 = vmatprep.subr.mxu0 %v465_v0  ;;  %366 = vmatprep.mubr.msk.f32.mxu0 %vm466_vm0, %v465_v0  ;;  %v43_v2 = vld [vmem:[#allocation5 + $0x8] sm:$0xff]  ;;  %v42_v3 = vld [vmem:[#allocation5] sm:$0xff]  ;;  %v41_v4 = vld [vmem:[#allocation2] sm:$0x3]  ;;  %vm325_vm3 = vcmask 1041409   ;;  %vm327_vm4 = vcmask 1043459  }
  0x1c   :  { %361 = vmatpush3.xpose.msk.msra.mxu0 %vm52_vm1, %v44_v1  ;;  %v351_v5 = vld [vmem:[%s508_s2] ss:$0 sm:$0xff]  ;;  %v498_v20 = vshrl.u32 %v159_v18, 7  ;;  %v198_v39 = vand.u32 127, %v159_v18  ;;  %vm329_vm5 = vcmask 1045509   ;;  %s468_s2 = smov [#allocation7]  }
  0x1d   :  { %362 = vmatprep.subr.mxu0 %v465_v0  ;;  %s341_s24 = sshll.u32 %s468_s2, 4  ;;  %vm331_vm6 = vcmask 1047559   ;;  %s342_s24 = int_to_ptr.vmem [resolvable:$true] %s341_s24 }
  0x1e   :  { %v168_v22 = vsub.s32 1, %v498_v20  ;;  %v161_v23 = vsub.s32 0, %v498_v20  ;;  %v199_v40 = vadd.s32 128, %v198_v39  ;;  %v204_v43 = vshra.s32 %v198_v39, 4  ;;  %s435_s25 = scalar_lea.vmem %s342_s24, 64  ;;  %p440_p11 = scmp.lt.s32.totalorder %s342_s24, %s342_s24 }
  0x1f   :  { %v200_v45 = vand.u32 15, %v198_v39  ;;  %p436_p10 = scmp.ne.s32.totalorder %s342_s24, %s435_s25  ;;  %p441_p12 = scmp.lt.s32.totalorder %s435_s25, %s435_s25 }
  0x20   :  { %363 = vmatpush3.xpose.msk.msra.mxu0 %vm52_vm1, %v43_v2  ;;  %v205_v44 = vshra.s32 %v199_v40, 4  ;;  %v201_v46 = vand.u32 15, %v199_v40  ;;  %v206_v47 = vcvt.s32.f32 %v204_v43  ;;  %v467_v40 = vmov 1983009808  }
  0x21   :  { %364 = vmatprep.subr.mxu0 %v465_v0  ;;  %v202_v51 = vcvt.s32.f32 %v200_v45  ;;  %p442_p13 = por %p441_p12, %p440_p11 }
  0x22   :  { %v207_v48 = vcvt.s32.f32 %v205_v44  ;;  %v203_v52 = vcvt.s32.f32 %v201_v46 }
  0x23   :  { %p443_p0 = pnand %p442_p13, %p436_p10 }
  0x24   :  { %365 = vmatpush3.xpose.msk.msra.mxu0 %vm52_vm1, %v42_v3 }
  0x27   :  { %367 = vmatmul.mubr.msk.f32.vlgmr.msra.gmra.mxu0 %vm52_vm1, %v41_v4 }
  0xe7   :  { %v131_v6 = vpop.f32.mrf.mxu0 }
  0xe8   :  { %v132_v7 = vadd.f32 %v351_v5, %v131_v6 }
  0xe9   :  { %v368_v8 = vpop.f32.mrf.mxu0 }
  0xea   :  { %v135_v9 = vsub.f32 0.0, %v132_v7  ;;  %v143_v10 = vand.u32 2147483647, %v132_v7  ;;  %v142_v32 = vmax.f32 %v132_v7, 0.0 }
  0xec   :  { %v136_v11 = vmul.f32 1.442695, %v135_v9  ;;  %v144_v12 = vsub.f32 0.0, %v143_v10 }
  0xee   :  { %377 = vpow2.f32 %v136_v11  ;;  %v145_v13 = vmul.f32 1.442695, %v144_v12 }
  0xf0   :  { %379 = vpow2.f32 %v145_v13 }
  0xfb   :  { %v378_v14 = vpop.eup %377 }
  0xfc   :  { %v138_v15 = vadd.f32 1.0, %v378_v14 }
  0xfd   :  { %v380_v16 = vpop.eup %379 }
  0xfe   :  { %v147_v17 = vadd.f32 1.0, %v380_v16  ;;  %381 = vrcp.f32 %v138_v15  ;;  %v150_v19 = vmul.f32 -0.5, %v380_v16  ;;  %v153_v25 = vand.u32 2147483647, %v380_v16 }
 0x100   :  { %383 = vlog2.f32 %v147_v17  ;;  %v151_v21 = vadd.f32 1.0, %v150_v19  ;;  %vm154_vm2 = vcmp.lt.f32.partialorder %v153_v25, 0.0004427343 }
 0x102   :  { %v152_v29 = vmul.f32 %v380_v16, %v151_v21 }
 0x10b   :  { %v382_v24 = vpop.eup %381 }
 0x10c   :  { %v141_v26 = vmul.f32 15.0, %v382_v24 }
 0x10d   :  { %v384_v27 = vpop.eup %383 }
 0x10e   :  { %v149_v28 = vmul.f32 0.6931472, %v384_v27  ;;  %v169_v30 = vrot.slane %v141_v26, %v168_v22  ;;  %v162_v31 = vrot.slane %v141_v26, %v161_v23 }
 0x110   :  { %v155_v33 = vsel %vm154_vm2, %v152_v29, %v149_v28  ;;  %171 = vbcast.lane.b32.xlu0 %v169_v30, 256  ;;  %164 = vbcast.lane.b32.xlu1 %v162_v31, 256 }
 0x111   :  { %v156_v34 = vadd.f32 %v155_v33, %v142_v32 }
 0x113   :  { %v157_v35 = vadd.f32 0.5, %v156_v34 }
 0x114   :  { %179 = vbcast.lane.b32.xlu0 %v169_v30, 264  ;;  %175 = vbcast.lane.b32.xlu1 %v162_v31, 264 }
 0x115   :  { %385 = vrcp.f32 %v157_v35 }
 0x122   :  { %v386_v36 = vpop.eup %385 }
 0x123   :  { %v192_v37 = vrot.slane %v386_v36, %v168_v22  ;;  %v184_v38 = vrot.slane %v386_v36, %v161_v23 }
 0x125   :  { %195 = vbcast.lane.b32.xlu0 %v192_v37, 272  ;;  %187 = vbcast.lane.b32.xlu1 %v184_v38, 272 }
 0x182   :  { %v172_v41 = vpop.permute.xlu0 %171  ;;  %v165_v42 = vpop.permute.xlu1 %164 }
 0x183   :  { %v210_v57 = vsub.f32 %v202_v51, %v172_v41  ;;  %v211_v58 = vsub.f32 %v203_v52, %v172_v41  ;;  %v208_v59 = vsub.f32 %v202_v51, %v165_v42  ;;  %v209_v60 = vsub.f32 %v203_v52, %v165_v42 }
 0x184   :  { %v306_v41 = vunpack.c.l.s4 %v467_v40 }
 0x185   :  { %v214_v1 = vmul.f32 %v210_v57, %v210_v57  ;;  %v215_v2 = vmul.f32 %v211_v58, %v211_v58  ;;  %v212_v3 = vmul.f32 %v208_v59, %v208_v59  ;;  %v213_v4 = vmul.f32 %v209_v60, %v209_v60 }
 0x186   :  { %v180_v49 = vpop.permute.xlu0 %179  ;;  %v176_v50 = vpop.permute.xlu1 %175 }
 0x187   :  { %v218_v53 = vsub.f32 %v206_v47, %v180_v49  ;;  %v219_v54 = vsub.f32 %v207_v48, %v180_v49  ;;  %v216_v55 = vsub.f32 %v206_v47, %v176_v50  ;;  %v217_v56 = vsub.f32 %v207_v48, %v176_v50 }
 0x188   :  { %v307_v50 = vunpack.c.0.s8 %v306_v41 }
 0x189   :  { %v222_v61 = vmul.f32 %v218_v53, %v218_v53  ;;  %v223_v62 = vmul.f32 %v219_v54, %v219_v54  ;;  %v220_v63 = vmul.f32 %v216_v55, %v216_v55  ;;  %v221_v0 = vmul.f32 %v217_v56, %v217_v56 }
 0x18a   :  { %v310_v59 = vsub.s32 %v307_v50, %v498_v20 }
 0x18b   :  { %v226_v5 = vadd.f32 %v222_v61, %v214_v1  ;;  %v227_v6 = vadd.f32 %v223_v62, %v215_v2  ;;  %v224_v7 = vadd.f32 %v220_v63, %v212_v3  ;;  %v225_v8 = vadd.f32 %v221_v0, %v213_v4 }
 0x18d   :  { %v230_v9 = vsub.f32 0.0, %v226_v5  ;;  %v231_v10 = vsub.f32 0.0, %v227_v6  ;;  %v228_v11 = vsub.f32 0.0, %v224_v7  ;;  %v229_v12 = vsub.f32 0.0, %v225_v8 }
 0x197   :  { %v196_v13 = vpop.permute.xlu0 %195  ;;  %v188_v14 = vpop.permute.xlu1 %187 }
 0x198   :  { %v234_v15 = vmul.f32 %v230_v9, %v196_v13  ;;  %v235_v16 = vmul.f32 %v231_v10, %v196_v13  ;;  %v232_v17 = vmul.f32 %v228_v11, %v188_v14  ;;  %v233_v18 = vmul.f32 %v229_v12, %v188_v14 }
 0x19a   :  { %v240_v19 = vmul.f32 1.442695, %v234_v15  ;;  %v242_v21 = vmul.f32 1.442695, %v235_v16  ;;  %v236_v22 = vmul.f32 1.442695, %v232_v17 }
 0x19b   :  { %v238_v23 = vmul.f32 1.442695, %v233_v18 }
 0x19c   :  { %387 = vpow2.f32 %v240_v19 }
 0x19d   :  { %389 = vpow2.f32 %v242_v21 }
 0x19e   :  { %391 = vpow2.f32 %v236_v22 }
 0x19f   :  { %393 = vpow2.f32 %v238_v23 }
 0x1a9   :  { %v388_v24 = vpop.eup %387 }
 0x1aa   :  { %v390_v25 = vpop.eup %389  ;;  %v246_v26 = vsub.f32 1.0, %v388_v24 }
 0x1ab   :  { %v392_v27 = vpop.eup %391  ;;  %v247_v28 = vsub.f32 1.0, %v390_v25 }
 0x1ac   :  { %v394_v29 = vpop.eup %393  ;;  %v254_v30 = vrot.slane %v246_v26, 4  ;;  %v244_v31 = vsub.f32 1.0, %v392_v27 }
 0x1ad   :  { %v255_v32 = vrot.slane %v247_v28, 4  ;;  %v245_v33 = vsub.f32 1.0, %v394_v29 }
 0x1ae   :  { %v262_v34 = vmul.f32 %v254_v30, %v246_v26  ;;  %v252_v35 = vrot.slane %v244_v31, 4 }
 0x1af   :  { %v263_v36 = vmul.f32 %v255_v32, %v247_v28  ;;  %v253_v37 = vrot.slane %v245_v33, 4 }
 0x1b0   :  { %v270_v38 = vrot.slane %v262_v34, 2  ;;  %v260_v39 = vmul.f32 %v252_v35, %v244_v31 }
 0x1b1   :  { %v271_v42 = vrot.slane %v263_v36, 2  ;;  %v261_v43 = vmul.f32 %v253_v37, %v245_v33 }
 0x1b2   :  { %v278_v44 = vmul.f32 %v270_v38, %v262_v34  ;;  %v268_v45 = vrot.slane %v260_v39, 2 }
 0x1b3   :  { %v279_v46 = vmul.f32 %v271_v42, %v263_v36  ;;  %v269_v47 = vrot.slane %v261_v43, 2 }
 0x1b4   :  { %v286_v48 = vrot.slane %v278_v44, 1  ;;  %v276_v49 = vmul.f32 %v268_v45, %v260_v39 }
 0x1b5   :  { %v287_v51 = vrot.slane %v279_v46, 1  ;;  %v277_v52 = vmul.f32 %v269_v47, %v261_v43 }
 0x1b6   :  { %v294_v53 = vmul.f32 %v286_v48, %v278_v44  ;;  %v284_v54 = vrot.slane %v276_v49, 1 }
 0x1b7   :  { %v295_v55 = vmul.f32 %v287_v51, %v279_v46  ;;  %v285_v56 = vrot.slane %v277_v52, 1 }
 0x1b8   :  { %v298_v57 = vsub.f32 1.0, %v294_v53  ;;  %v292_v58 = vmul.f32 %v284_v54, %v276_v49 }
 0x1b9   :  { %v299_v60 = vsub.f32 1.0, %v295_v55  ;;  %v293_v61 = vmul.f32 %v285_v56, %v277_v52 }
 0x1ba   :  { %v296_v62 = vsub.f32 1.0, %v292_v58 }
 0x1bb   :  { %v297_v63 = vsub.f32 1.0, %v293_v61  ;;  %v312_v0 = vcombine.low %v298_v57, %v299_v60 }
 0x1bd   :  { %v304_v1 = vcombine.low %v296_v62, %v297_v63  ;;  %v319_v2 = vrot.slane %v312_v0, %v310_v59 }
 0x1bf   :  { %v311_v3 = vrot.slane %v304_v1, %v310_v59  ;;  %v324_v4 = vrot.slane %v319_v2, 7 }
 0x1c1   :  { %v326_v5 = vsel %vm325_vm3, %v324_v4, %v311_v3 }
 0x1c2   :  { %v328_v6 = vsel %vm327_vm4, %v324_v4, %v326_v5 }
 0x1c3   :  { %v330_v7 = vsel %vm329_vm5, %v324_v4, %v328_v6 }
 0x1c4   :  { %v332_v20 = vsel %vm331_vm6, %v324_v4, %v330_v7 }
 0x1c5   :  { %334 = vst [vmem:[#allocation7] sm:$0xf] %v332_v20 }
 0x1c6   :  { %446 = shalt.err (!%p443_p0)
}
 0x1c7   :  { %344 = dma.vmem_to_hbm [thread:$0]  %s342_s24, 64, %s509_s3, [#allocation4]  }
 0x1c8   :  { %459 = dma.done.wait [#allocation4], 64  }
 0x1c9   :  { %460 = vsyncadd [#allocation4], 4294967232 }
 0x1ca   :  { %348 = vsyncpa [#allocation3], 1 }
 0x1cb   :  { %349 = vsyncpa [#allocation6], 1 }
 0x1cc   :  { %350 = vsyncpa [#allocation4], 1 }

</bundles_post_ra>
